<compile_context>
chip_gen: v7x
topology: tpu7x:2x2x1
jax: 0.10.0
libtpu: 0.0.40
codegen_flags: <defaults>
</compile_context>

<pallas_src>
import functools

import jax
import jax.numpy as jnp
from jax import lax
from jax.experimental import pallas as pl
from jax.experimental.pallas import tpu as pltpu

ALPHA = 1.5
ALPHA1 = 0.5


def _shift_rows(x, direction):
    """Shift by one row (sublane axis) with zero-fill at the image border.

    direction=+1 -> out[i, j] = x[i-1, j]  (zero on the top row)
    direction=-1 -> out[i, j] = x[i+1, j]  (zero on the bottom row)
    """
    H, W = x.shape
    zero = jnp.zeros((1, W), dtype=x.dtype)
    if direction > 0:
        return jnp.concatenate([zero, x[: H - 1, :]], axis=0)
    return jnp.concatenate([x[1:, :], zero], axis=0)


def _shift_cols(x, direction):
    """Shift by one column (lane axis) with zero-fill at the image border.

    direction=+1 -> out[i, j] = x[i, j-1]  (zero on the left column)
    direction=-1 -> out[i, j] = x[i, j+1]  (zero on the right column)
    """
    H, W = x.shape
    zero = jnp.zeros((H, 1), dtype=x.dtype)
    if direction > 0:
        return jnp.concatenate([zero, x[:, : W - 1]], axis=1)
    return jnp.concatenate([x[:, 1:], zero], axis=1)


def _sobel(x):
    """Separable 3x3 Sobel cross-correlation with zero padding (PyTorch Conv2d)."""
    up = _shift_rows(x, +1)          # x[i-1, j]
    dn = _shift_rows(x, -1)          # x[i+1, j]
    c = up + 2.0 * x + dn            # vertical [1, 2, 1]
    r = up - dn                      # vertical [1, 0, -1]
    # ngx = [[1,0,-1],[2,0,-2],[1,0,-1]]  ->  dx[i,j] = c[i,j-1] - c[i,j+1]
    dx = _shift_cols(c, +1) - _shift_cols(c, -1)
    # ngy = [[1,2,1],[0,0,0],[-1,-2,-1]]  ->  dy[i,j] = r[i,j-1] + 2*r[i,j] + r[i,j+1]
    dy = _shift_cols(r, +1) + 2.0 * r + _shift_cols(r, -1)
    return dx, dy


def _refine_loss_kernel(g_ref, p_ref, m_ref, o_ref, *, alpha, alpha1):
    # g_ref, p_ref: (1, H, W) f32   gray image / prediction (unpadded)
    # m_ref:        (1, H, W) bf16  boundary mask (0/1)
    # o_ref:        (1, 1, 128) f32 lane-dense per-batch partial sum
    g = g_ref[0]
    p = p_ref[0]
    msk = m_ref[0].astype(jnp.float32)

    gx, gy = _sobel(g)
    px, py = _sobel(p)

    vg = gx * gx + gy * gy + 1e-6
    vp = px * px + py * py + 1e-6
    inv_gm = lax.rsqrt(vg)           # EUP, no VALU divides
    inv_pm = lax.rsqrt(vp)
    gm = vg * inv_gm                 # == sqrt(vg)
    pm = vp * inv_pm                 # == sqrt(vp)

    cos_sim = (gx * px + gy * py) * (inv_gm * inv_pm)
    l_cos = (1.0 - jnp.abs(cos_sim)) * pm
    l_mag = jnp.maximum(alpha * gm - pm, 0.0)
    l_ref = (alpha1 * l_cos + (1.0 - alpha1) * l_mag) * msk

    partial = jnp.sum(l_ref)
    o_ref[...] = jnp.full((1, 1, 128), partial, dtype=jnp.float32)


def refine_loss(grayimg, pred, mask, *, alpha=ALPHA, alpha1=ALPHA1):
    """grayimg, pred, mask: (B, 1, H, W) float32 (NCHW, like the PyTorch module)."""
    B, C, H, W = grayimg.shape
    assert C == 1
    g = grayimg.reshape(B, H, W).astype(jnp.float32)
    p = pred.reshape(B, H, W).astype(jnp.float32)
    # 0/1 boundary mask is exactly representable in bf16 -> halve its HBM bytes.
    m = mask.reshape(B, H, W).astype(jnp.bfloat16)

    kernel = functools.partial(
        _refine_loss_kernel, alpha=float(alpha), alpha1=float(alpha1)
    )

    partials = pl.pallas_call(
        kernel,
        out_shape=jax.ShapeDtypeStruct((B, 1, 128), jnp.float32),
        grid=(B,),
        in_specs=[
            pl.BlockSpec((1, H, W), lambda b: (b, 0, 0)),
            pl.BlockSpec((1, H, W), lambda b: (b, 0, 0)),
            pl.BlockSpec((1, H, W), lambda b: (b, 0, 0)),
        ],
        out_specs=pl.BlockSpec((1, 1, 128), lambda b: (b, 0, 0)),
        compiler_params=pltpu.CompilerParams(
            dimension_semantics=("parallel",),
            vmem_limit_bytes=32 * 1024 * 1024,
        ),
    )(g, p, m)

    # Tiny finalization in plain JAX (keeps all grid axes parallel / megacore-able).
    return jnp.sum(partials[:, 0, 0]) / (B * H * W)


def _refine_loss_ref(grayimg, pred, mask, *, alpha=ALPHA, alpha1=ALPHA1):
    """Pure-JAX reference (same math as the PyTorch module) for a sanity check."""
    B, C, H, W = grayimg.shape
    g = grayimg.reshape(B, H, W)
    p = pred.reshape(B, H, W)
    m = mask.reshape(B, H, W)
    gpad = jnp.pad(g, ((0, 0), (1, 1), (1, 1)))
    ppad = jnp.pad(p, ((0, 0), (1, 1), (1, 1)))

    def sobel(x):
        x00 = x[:, 0:H, 0:W]
        x01 = x[:, 0:H, 1:W + 1]
        x02 = x[:, 0:H, 2:W + 2]
        x10 = x[:, 1:H + 1, 0:W]
        x12 = x[:, 1:H + 1, 2:W + 2]
        x20 = x[:, 2:H + 2, 0:W]
        x21 = x[:, 2:H + 2, 1:W + 1]
        x22 = x[:, 2:H + 2, 2:W + 2]
        dx = x00 - x02 + 2 * x10 - 2 * x12 + x20 - x22
        dy = x00 + 2 * x01 + x02 - x20 - 2 * x21 - x22
        return dx, dy

    gx, gy = sobel(gpad)
    px, py = sobel(ppad)
    gm = jnp.sqrt(gx * gx + gy * gy + 1e-6)
    pm = jnp.sqrt(px * px + py * py + 1e-6)
    lcos = (1 - jnp.abs((gx / gm) * (px / pm) + (gy / gm) * (py / pm))) * pm
    lmag = jnp.maximum(alpha * gm - pm, 0.0)
    return jnp.mean((alpha1 * lcos + (1 - alpha1) * lmag) * m)


if __name__ == "__main__":
    key = jax.random.PRNGKey(0)
    k1, k2, k3 = jax.random.split(key, 3)

    B, C, H, W = 2, 1, 16, 16  # grayscale images -> Conv2d(1, 1, 3) path
    grayimg = jax.random.uniform(k1, (B, C, H, W), dtype=jnp.float32)
    pred = jax.random.uniform(k2, (B, C, H, W), dtype=jnp.float32)
    mask = (jax.random.uniform(k3, (B, C, H, W)) > 0.5).astype(jnp.float32)

    loss = refine_loss(grayimg, pred, mask)
    loss = jax.block_until_ready(loss)

    ref = jax.block_until_ready(_refine_loss_ref(grayimg, pred, mask))
    assert jnp.allclose(loss, ref, rtol=1e-4, atol=1e-5), (loss, ref)

    print("KERNEL_OK")
</pallas_src>

<mosaic_0001>
module attributes {stable_mosaic.version = 11 : i64} {
  func.func @_refine_loss_kernel(%arg0: i32, %arg1: memref<1x16x16xf32, #tpu.memory_space<vmem>>, %arg2: memref<1x16x16xf32, #tpu.memory_space<vmem>>, %arg3: memref<1x16x16xbf16, #tpu.memory_space<vmem>>, %arg4: memref<1x1x128xf32, #tpu.memory_space<vmem>>) attributes {dimension_semantics = [#tpu.dimension_semantics<parallel>], iteration_bounds = array<i64: 2>, scalar_prefetch = 0 : i64, scratch_operands = 0 : i64, tpu.core_type = #tpu.core_type<tc>, window_params = [{transform_indices = @transform_0, window_bounds = array<i64: 1, 16, 16>}, {transform_indices = @transform_1, window_bounds = array<i64: 1, 16, 16>}, {transform_indices = @transform_2, window_bounds = array<i64: 1, 16, 16>}, {transform_indices = @transform_3, window_bounds = array<i64: 1, 1, 128>}]} {
    %c0 = arith.constant 0 : index
    %c0_0 = arith.constant 0 : index
    %c0_1 = arith.constant 0 : index
    %0 = vector.load %arg1[%c0, %c0_0, %c0_1] : memref<1x16x16xf32, #tpu.memory_space<vmem>>, vector<1x16x16xf32>
    %1 = vector.shape_cast %0 : vector<1x16x16xf32> to vector<16x16xf32>
    %c0_2 = arith.constant 0 : index
    %c0_3 = arith.constant 0 : index
    %c0_4 = arith.constant 0 : index
    %2 = vector.load %arg2[%c0_2, %c0_3, %c0_4] : memref<1x16x16xf32, #tpu.memory_space<vmem>>, vector<1x16x16xf32>
    %3 = vector.shape_cast %2 : vector<1x16x16xf32> to vector<16x16xf32>
    %c0_5 = arith.constant 0 : index
    %c0_6 = arith.constant 0 : index
    %c0_7 = arith.constant 0 : index
    %4 = vector.load %arg3[%c0_5, %c0_6, %c0_7] : memref<1x16x16xbf16, #tpu.memory_space<vmem>>, vector<1x16x16xbf16>
    %5 = vector.shape_cast %4 : vector<1x16x16xbf16> to vector<16x16xbf16>
    %6 = arith.extf %5 : vector<16x16xbf16> to vector<16x16xf32>
    %cst = arith.constant 0.000000e+00 : f32
    %7 = vector.broadcast %cst : f32 to vector<1x16xf32>
    %8 = vector.extract_strided_slice %1 {offsets = [0, 0], sizes = [15, 16], strides = [1, 1]} : vector<16x16xf32> to vector<15x16xf32>
    %9 = tpu.concatenate %7, %8 in 0 : vector<1x16xf32>, vector<15x16xf32> -> vector<16x16xf32>
    %cst_8 = arith.constant 0.000000e+00 : f32
    %10 = vector.broadcast %cst_8 : f32 to vector<1x16xf32>
    %11 = vector.extract_strided_slice %1 {offsets = [1, 0], sizes = [15, 16], strides = [1, 1]} : vector<16x16xf32> to vector<15x16xf32>
    %12 = tpu.concatenate %11, %10 in 0 : vector<15x16xf32>, vector<1x16xf32> -> vector<16x16xf32>
    %cst_9 = arith.constant 2.000000e+00 : f32
    %13 = vector.broadcast %cst_9 : f32 to vector<16x16xf32>
    %14 = arith.mulf %13, %1 : vector<16x16xf32>
    %15 = arith.addf %9, %14 : vector<16x16xf32>
    %16 = arith.addf %15, %12 : vector<16x16xf32>
    %17 = arith.subf %9, %12 : vector<16x16xf32>
    %cst_10 = arith.constant 0.000000e+00 : f32
    %18 = vector.broadcast %cst_10 : f32 to vector<16x1xf32>
    %19 = vector.extract_strided_slice %16 {offsets = [0, 0], sizes = [16, 15], strides = [1, 1]} : vector<16x16xf32> to vector<16x15xf32>
    %20 = tpu.concatenate %18, %19 in 1 : vector<16x1xf32>, vector<16x15xf32> -> vector<16x16xf32>
    %cst_11 = arith.constant 0.000000e+00 : f32
    %21 = vector.broadcast %cst_11 : f32 to vector<16x1xf32>
    %22 = vector.extract_strided_slice %16 {offsets = [0, 1], sizes = [16, 15], strides = [1, 1]} : vector<16x16xf32> to vector<16x15xf32>
    %23 = tpu.concatenate %22, %21 in 1 : vector<16x15xf32>, vector<16x1xf32> -> vector<16x16xf32>
    %24 = arith.subf %20, %23 : vector<16x16xf32>
    %cst_12 = arith.constant 0.000000e+00 : f32
    %25 = vector.broadcast %cst_12 : f32 to vector<16x1xf32>
    %26 = vector.extract_strided_slice %17 {offsets = [0, 0], sizes = [16, 15], strides = [1, 1]} : vector<16x16xf32> to vector<16x15xf32>
    %27 = tpu.concatenate %25, %26 in 1 : vector<16x1xf32>, vector<16x15xf32> -> vector<16x16xf32>
    %cst_13 = arith.constant 2.000000e+00 : f32
    %28 = vector.broadcast %cst_13 : f32 to vector<16x16xf32>
    %29 = arith.mulf %28, %17 : vector<16x16xf32>
    %30 = arith.addf %27, %29 : vector<16x16xf32>
    %cst_14 = arith.constant 0.000000e+00 : f32
    %31 = vector.broadcast %cst_14 : f32 to vector<16x1xf32>
    %32 = vector.extract_strided_slice %17 {offsets = [0, 1], sizes = [16, 15], strides = [1, 1]} : vector<16x16xf32> to vector<16x15xf32>
    %33 = tpu.concatenate %32, %31 in 1 : vector<16x15xf32>, vector<16x1xf32> -> vector<16x16xf32>
    %34 = arith.addf %30, %33 : vector<16x16xf32>
    %cst_15 = arith.constant 0.000000e+00 : f32
    %35 = vector.broadcast %cst_15 : f32 to vector<1x16xf32>
    %36 = vector.extract_strided_slice %3 {offsets = [0, 0], sizes = [15, 16], strides = [1, 1]} : vector<16x16xf32> to vector<15x16xf32>
    %37 = tpu.concatenate %35, %36 in 0 : vector<1x16xf32>, vector<15x16xf32> -> vector<16x16xf32>
    %cst_16 = arith.constant 0.000000e+00 : f32
    %38 = vector.broadcast %cst_16 : f32 to vector<1x16xf32>
    %39 = vector.extract_strided_slice %3 {offsets = [1, 0], sizes = [15, 16], strides = [1, 1]} : vector<16x16xf32> to vector<15x16xf32>
    %40 = tpu.concatenate %39, %38 in 0 : vector<15x16xf32>, vector<1x16xf32> -> vector<16x16xf32>
    %cst_17 = arith.constant 2.000000e+00 : f32
    %41 = vector.broadcast %cst_17 : f32 to vector<16x16xf32>
    %42 = arith.mulf %41, %3 : vector<16x16xf32>
    %43 = arith.addf %37, %42 : vector<16x16xf32>
    %44 = arith.addf %43, %40 : vector<16x16xf32>
    %45 = arith.subf %37, %40 : vector<16x16xf32>
    %cst_18 = arith.constant 0.000000e+00 : f32
    %46 = vector.broadcast %cst_18 : f32 to vector<16x1xf32>
    %47 = vector.extract_strided_slice %44 {offsets = [0, 0], sizes = [16, 15], strides = [1, 1]} : vector<16x16xf32> to vector<16x15xf32>
    %48 = tpu.concatenate %46, %47 in 1 : vector<16x1xf32>, vector<16x15xf32> -> vector<16x16xf32>
    %cst_19 = arith.constant 0.000000e+00 : f32
    %49 = vector.broadcast %cst_19 : f32 to vector<16x1xf32>
    %50 = vector.extract_strided_slice %44 {offsets = [0, 1], sizes = [16, 15], strides = [1, 1]} : vector<16x16xf32> to vector<16x15xf32>
    %51 = tpu.concatenate %50, %49 in 1 : vector<16x15xf32>, vector<16x1xf32> -> vector<16x16xf32>
    %52 = arith.subf %48, %51 : vector<16x16xf32>
    %cst_20 = arith.constant 0.000000e+00 : f32
    %53 = vector.broadcast %cst_20 : f32 to vector<16x1xf32>
    %54 = vector.extract_strided_slice %45 {offsets = [0, 0], sizes = [16, 15], strides = [1, 1]} : vector<16x16xf32> to vector<16x15xf32>
    %55 = tpu.concatenate %53, %54 in 1 : vector<16x1xf32>, vector<16x15xf32> -> vector<16x16xf32>
    %cst_21 = arith.constant 2.000000e+00 : f32
    %56 = vector.broadcast %cst_21 : f32 to vector<16x16xf32>
    %57 = arith.mulf %56, %45 : vector<16x16xf32>
    %58 = arith.addf %55, %57 : vector<16x16xf32>
    %cst_22 = arith.constant 0.000000e+00 : f32
    %59 = vector.broadcast %cst_22 : f32 to vector<16x1xf32>
    %60 = vector.extract_strided_slice %45 {offsets = [0, 1], sizes = [16, 15], strides = [1, 1]} : vector<16x16xf32> to vector<16x15xf32>
    %61 = tpu.concatenate %60, %59 in 1 : vector<16x15xf32>, vector<16x1xf32> -> vector<16x16xf32>
    %62 = arith.addf %58, %61 : vector<16x16xf32>
    %63 = arith.mulf %24, %24 : vector<16x16xf32>
    %64 = arith.mulf %34, %34 : vector<16x16xf32>
    %65 = arith.addf %63, %64 : vector<16x16xf32>
    %cst_23 = arith.constant 9.99999997E-7 : f32
    %66 = vector.broadcast %cst_23 : f32 to vector<16x16xf32>
    %67 = arith.addf %65, %66 : vector<16x16xf32>
    %68 = arith.mulf %52, %52 : vector<16x16xf32>
    %69 = arith.mulf %62, %62 : vector<16x16xf32>
    %70 = arith.addf %68, %69 : vector<16x16xf32>
    %cst_24 = arith.constant 9.99999997E-7 : f32
    %71 = vector.broadcast %cst_24 : f32 to vector<16x16xf32>
    %72 = arith.addf %70, %71 : vector<16x16xf32>
    %73 = math.rsqrt %67 : vector<16x16xf32>
    %74 = math.rsqrt %72 : vector<16x16xf32>
    %75 = arith.mulf %67, %73 : vector<16x16xf32>
    %76 = arith.mulf %72, %74 : vector<16x16xf32>
    %77 = arith.mulf %24, %52 : vector<16x16xf32>
    %78 = arith.mulf %34, %62 : vector<16x16xf32>
    %79 = arith.addf %77, %78 : vector<16x16xf32>
    %80 = arith.mulf %73, %74 : vector<16x16xf32>
    %81 = arith.mulf %79, %80 : vector<16x16xf32>
    %82 = math.absf %81 : vector<16x16xf32>
    %cst_25 = arith.constant 1.000000e+00 : f32
    %83 = vector.broadcast %cst_25 : f32 to vector<16x16xf32>
    %84 = arith.subf %83, %82 : vector<16x16xf32>
    %85 = arith.mulf %84, %76 : vector<16x16xf32>
    %cst_26 = arith.constant 1.500000e+00 : f32
    %86 = vector.broadcast %cst_26 : f32 to vector<16x16xf32>
    %87 = arith.mulf %86, %75 : vector<16x16xf32>
    %88 = arith.subf %87, %76 : vector<16x16xf32>
    %cst_27 = arith.constant 0.000000e+00 : f32
    %89 = vector.broadcast %cst_27 : f32 to vector<16x16xf32>
    %90 = arith.maximumf %88, %89 : vector<16x16xf32>
    %cst_28 = arith.constant 5.000000e-01 : f32
    %91 = vector.broadcast %cst_28 : f32 to vector<16x16xf32>
    %92 = arith.mulf %91, %85 : vector<16x16xf32>
    %cst_29 = arith.constant 5.000000e-01 : f32
    %93 = vector.broadcast %cst_29 : f32 to vector<16x16xf32>
    %94 = arith.mulf %93, %90 : vector<16x16xf32>
    %95 = arith.addf %92, %94 : vector<16x16xf32>
    %96 = arith.mulf %95, %6 : vector<16x16xf32>
    %97 = vector.shape_cast %96 : vector<16x16xf32> to vector<1x16x16xf32>
    %cst_30 = arith.constant dense<0.000000e+00> : vector<1xf32>
    %98 = vector.multi_reduction <add>, %97, %cst_30 [1, 2] : vector<1x16x16xf32> to vector<1xf32>
    %99 = vector.shape_cast %98 : vector<1xf32> to vector<1x1x1xf32>
    %100 = vector.extract %99[0, 0, 0] : f32 from vector<1x1x1xf32>
    %101 = vector.broadcast %100 : f32 to vector<1x1x128xf32>
    %c0_31 = arith.constant 0 : index
    %c0_32 = arith.constant 0 : index
    %c0_33 = arith.constant 0 : index
    %102 = vector.load %arg4[%c0_31, %c0_32, %c0_33] : memref<1x1x128xf32, #tpu.memory_space<vmem>>, vector<1x1x128xf32>
    tpu.vector_store %arg4[%c0_31, %c0_32, %c0_33], %101 {strides = array<i32>} : memref<1x1x128xf32, #tpu.memory_space<vmem>>, vector<1x1x128xf32>,
    return
  }
  func.func @transform_0(%arg0: i32) -> (i32, i32, i32) {
    %c0_i32 = arith.constant 0 : i32
    %c0_i32_0 = arith.constant 0 : i32
    %c0_i32_1 = arith.constant 0 : i32
    return %arg0, %c0_i32, %c0_i32_0 : i32, i32, i32
  }
  func.func @transform_1(%arg0: i32) -> (i32, i32, i32) {
    %c0_i32 = arith.constant 0 : i32
    %c0_i32_0 = arith.constant 0 : i32
    %c0_i32_1 = arith.constant 0 : i32
    return %arg0, %c0_i32, %c0_i32_0 : i32, i32, i32
  }
  func.func @transform_2(%arg0: i32) -> (i32, i32, i32) {
    %c0_i32 = arith.constant 0 : i32
    %c0_i32_0 = arith.constant 0 : i32
    %c0_i32_1 = arith.constant 0 : i32
    return %arg0, %c0_i32, %c0_i32_0 : i32, i32, i32
  }
  func.func @transform_3(%arg0: i32) -> (i32, i32, i32) {
    %c0_i32 = arith.constant 0 : i32
    %c0_i32_0 = arith.constant 0 : i32
    %c0_i32_1 = arith.constant 0 : i32
    return %arg0, %c0_i32, %c0_i32_0 : i32, i32, i32
  }
}

</mosaic_0001>

<bundles_post_ra>
// kernel: tpu_custom_call.1
= control target key start
LH: loop header
LB: loop body
LE: loop exit
PB: predicated region body
PF: predicated region fallthrough
CT: control target
= control target key end

     0   :  { %s1177_s0 = inlined_call_operand.hbm [shape: f32[2,16,16], index: 0, kind: input, shape index: {}]   ;;  %s1178_s1 = inlined_call_operand.hbm [shape: f32[2,16,16], index: 1, kind: input, shape index: {}]   ;;  %s1179_s2 = inlined_call_operand.hbm [shape: bf16[2,16,16], index: 2, kind: input, shape index: {}]   ;;  %s1180_s3 = inlined_call_operand.hbm [shape: f32[2,1,128], index: 3, kind: output, shape index: {}]  }
   0x1   :  { %1185 = sst [smem:[#allocation12_spill]] %s1177_s0 }
   0x2   :  { %8 = vsyncpa [#allocation3], 0 }
   0x3   :  { %10 = vsyncpa [#allocation3 + $0x1], 0 }
   0x4   :  { %11 = vsyncpa [#allocation6], 0 }
   0x5   :  { %13 = vsyncpa [#allocation6 + $0x1], 0 }
   0x6   :  { %14 = vsyncpa [#allocation4], 0 }
   0x7   :  { %16 = vsyncpa [#allocation4 + $0x1], 0  ;;  %s890_s12 = smov 0   ;;  %s892_s13 = smov 0  }
   0x8   :  { %s894_s14 = smov 0   ;;  %s896_s15 = smov 0  }
   0x9 LB: > { %s911_s16 = sadd.s32 4294967295, %s858_s15   ;;  %s600_s17 = sadd.s32 4294967294, %s858_s15   ;;  %s858_s15 = sphi %s896_s15, %s1204_s15   ;;  %s854_s14 = sphi %s894_s14, %s1203_s14   ;;  %s850_s13 = sphi %s892_s13, %s1202_s13   ;;  %s846_s12 = sphi %s890_s12, %s1201_s12  }
   0xa   : > { %s915_s18 = sadd.s32 1, %s858_s15   ;;  %s29_s19 = sadd.s32 1, %s854_s14 }
   0xb   : > { %s26_s20 = ssub.s32 %s858_s15, %s915_s18  ;;  %p36_p0 = scmp.ne.s32.totalorder %s854_s14, %s850_s13 }
   0xc   : > { %p27_p1 = scmp.eq.s32.totalorder %s26_s20, 0  ;;  %p37_p2 = scmp.eq.s32.totalorder %s858_s15, 0 }
   0xd   : > { %p42_p3 = scmp.ne.s32.totalorder %s850_s13, %s846_s12  ;;  %p43_p4 = scmp.eq.s32.totalorder %s911_s16, 0 }
   0xe   : > { %s927_s21 = scalar_select %p27_p1, %s854_s14, %s29_s19  }
   0xf   : > { %p38_p5 = por %p37_p2, %p36_p0  ;;  %p929_p6 = por %p43_p4, %p42_p3 }
  0x10   : > { %p118_p7 = scmp.eq.s32.totalorder %s911_s16, 1  ;;  %p124_p8 = scmp.eq.s32.totalorder %s600_s17, 1 }
  0x11   : > { %s1186_s22 = scalar_select %p929_p6, 1, 0 }
  0x12   : > { %p650_p10 = scmp.lt.s32.totalorder %s858_s15, 2  ;;  %p936_p11 = por %p118_p7, %p36_p0 }
  0x13   : > { %p940_p12 = por %p124_p8, %p42_p3  ;;  %s945_s25 = sand.u32 1, %s854_s14  }
  0x14   : > { %s1187_s23 = scalar_select %p936_p11, 1, 0 }
  0x15   : > { %s1188_s24 = scalar_select %p940_p12, 1, 0 }
  0x16   : > { %s619_s26 = sshll.u32 %s858_s15, 8  ;;  %s603_s27 = sshll.u32 %s945_s25, 4 }
  0x17   : > { %p949_p13 = pnand %p650_p10, %p38_p5  ;;  %s165_s29 = sand.u32 1, %s858_s15  }
  0x18   : > { %s959_s5 = scalar_lea.hbm %s1178_s1, %s619_s26  ;;  %s169_s6 = scalar_lea.vmem [#allocation5], %s603_s27 }
  0x19   : > { %s176_s7 = sshll.u32 %s169_s6, 4  ;;  %s966_s8 = scalar_lea.sflag [#allocation6], %s165_s29  ;;  %s963_s7 = int_to_ptr.vmem [resolvable:$true] %s176_s7 }
  0x1a   : > { %s698_s9 = scalar_lea.hbm %s959_s5, 256  ;;  %p972_p2 = pneg %p949_p13 }
  0x1b   : > { %p699_p1 = scmp.ne.s32.totalorder %s959_s5, %s698_s9  ;;  %s703_s19 = scalar_lea.hbm %s1178_s1, 512 }
  0x1c   : > { %p704_p5 = scmp.lt.u32.totalorder %s959_s5, %s1178_s1  ;;  %p705_p7 = scmp.lt.u32.totalorder %s703_s19, %s698_s9 }
  0x1d   : > { %p701_p3 = pnand %p972_p2, %p699_p1  ;;  %p707_p10 = scmp.lt.u32.totalorder %s698_s9, %s959_s5 }
  0x1e   : > { %p706_p8 = por %p705_p7, %p704_p5 }
  0x1f   : > { %p702_p4 = pneg %p701_p3 }
  0x20   : > { %p708_p9 = por %p707_p10, %p706_p8 }
  0x22   : > { %p709_p0 = pnand %p708_p9, %p702_p4 }
  0x24   : > { %712 = shalt.err (!%p709_p0)
}
  0x25   : > { %s713_s29 = scalar_lea.vmem %s963_s7, 256  ;;  %s860_s4 = smov [#allocation5]  }
  0x26   : > { %p714_p1 = scmp.ne.s32.totalorder %s963_s7, %s713_s29  ;;  %s718_s6 = sshll.u32 %s860_s4, 4  ;;  %s719_s6 = int_to_ptr.vmem [resolvable:$false] %s718_s6 }
  0x27   : > { %s720_s11 = scalar_lea.vmem %s719_s6, 512  ;;  %p721_p11 = scmp.lt.s32.totalorder %s963_s7, %s719_s6 }
  0x28   : > { %p716_p3 = pnand %p714_p1, %p972_p2  ;;  %p722_p6 = scmp.lt.s32.totalorder %s720_s11, %s713_s29 }
  0x2a   : > { %p717_p12 = pneg %p716_p3  ;;  %p723_p5 = por %p722_p6, %p721_p11 }
  0x2c   : > { %p724_p7 = pnand %p723_p5, %p717_p12 }
  0x2e   : > { %727 = shalt.err (!%p724_p7)
}
  0x2f   : > { %s1183_s9 = smov 128   ;;  %s1184_s17 = smov 8  }
  0x30   : > { %642 = dma.hbm_to_vmem [thread:$0]  (!%p949_p13), %s959_s5, 256, %s963_s7, %s966_s8, %s1183_s9, %s1183_s9, %s1184_s17  }
  0x31   : > { %p205_p6 = scmp.lt.s32.totalorder %s858_s15, 3  ;;  %s1191_s0 = sld [smem:[#allocation12_spill]] }
  0x32   : > { %p1192_p9 = scmp.ge.s32.totalorder %s858_s15, 1  ;;  %s148_s4 = scalar_lea.vmem [#allocation2], %s603_s27 }
  0x33   : > { %s155_s6 = sshll.u32 %s148_s4, 4  ;;  %s609_s5 = sshll.u32 %s945_s25, 3  ;;  %s1015_s6 = int_to_ptr.vmem [resolvable:$true] %s155_s6 }
  0x34   : > { %p1009_p11 = pnand %p1192_p9, %p205_p6  ;;  %s145_s7 = scalar_lea.sflag [#allocation3], %s945_s25 }
  0x36   : > { %s1193_s29 = scalar_select %p1009_p11, 1, 0 }
  0x37   : > { %s1005_s30 = scalar_lea.hbm %s1191_s0, %s619_s26  ;;  %s733_s20 = scalar_lea.hbm %s1191_s0, 512 }
  0x38   : > { %s728_s11 = scalar_lea.hbm %s1005_s30, 256  ;;  %p734_p8 = scmp.lt.u32.totalorder %s1005_s30, %s1191_s0 }
  0x39   : > { %p729_p12 = scmp.ne.s32.totalorder %s1005_s30, %s728_s11  ;;  %p735_p10 = scmp.lt.u32.totalorder %s733_s20, %s728_s11 }
  0x3a   : > { %p737_p3 = scmp.lt.u32.totalorder %s728_s11, %s1005_s30 }
  0x3b   : > { %p731_p0 = pnand %p729_p12, %p972_p2  ;;  %p736_p1 = por %p735_p10, %p734_p8 }
  0x3d   : > { %p732_p4 = pneg %p731_p0  ;;  %p738_p5 = por %p737_p3, %p736_p1 }
  0x3f   : > { %p739_p7 = pnand %p738_p5, %p732_p4 }
  0x41   : > { %742 = shalt.err (!%p739_p7)
}
  0x42   : > { %s743_s27 = scalar_lea.vmem %s1015_s6, 256  ;;  %s863_s4 = smov [#allocation2]  }
  0x43   : > { %p744_p6 = scmp.ne.s32.totalorder %s1015_s6, %s743_s27  ;;  %s748_s26 = sshll.u32 %s863_s4, 4  ;;  %s749_s26 = int_to_ptr.vmem [resolvable:$false] %s748_s26 }
  0x44   : > { %s750_s9 = scalar_lea.vmem %s749_s26, 512  ;;  %p751_p0 = scmp.lt.s32.totalorder %s1015_s6, %s749_s26 }
  0x45   : > { %p746_p9 = pnand %p744_p6, %p972_p2  ;;  %p752_p11 = scmp.lt.s32.totalorder %s750_s9, %s743_s27 }
  0x47   : > { %p747_p12 = pneg %p746_p9  ;;  %p753_p8 = por %p752_p11, %p751_p0 }
  0x49   : > { %p754_p10 = pnand %p753_p8, %p747_p12 }
  0x4b   : > { %757 = shalt.err (!%p754_p10)
}
  0x4c   : > { %s1194_s17 = smov 8   ;;  %s1195_s11 = smov 128  }
  0x4d   : > { %639 = dma.hbm_to_vmem [thread:$0]  (!%p949_p13), %s1005_s30, 256, %s1015_s6, %s145_s7, %s1195_s11, %s1195_s11, %s1194_s17  }
  0x4e   : > { %s621_s19 = sshll.u32 %s858_s15, 7  ;;  %s190_s26 = scalar_lea.vmem [#allocation7], %s609_s5 }
  0x4f   : > { %s1049_s27 = scalar_lea.hbm %s1179_s2, %s621_s19  ;;  %s197_s9 = sshll.u32 %s190_s26, 4  ;;  %s1053_s9 = int_to_ptr.vmem [resolvable:$true] %s197_s9 }
  0x50   : > { %s758_s0 = scalar_lea.hbm %s1049_s27, 128  ;;  %s763_s7 = scalar_lea.hbm %s1179_s2, 256 }
  0x51   : > { %p759_p11 = scmp.ne.s32.totalorder %s1049_s27, %s758_s0  ;;  %p764_p3 = scmp.lt.u32.totalorder %s1049_s27, %s1179_s2 }
  0x52   : > { %p765_p5 = scmp.lt.u32.totalorder %s763_s7, %s758_s0  ;;  %p767_p6 = scmp.lt.u32.totalorder %s758_s0, %s1049_s27 }
  0x53   : > { %p761_p4 = pnand %p759_p11, %p972_p2 }
  0x54   : > { %p766_p7 = por %p765_p5, %p764_p3 }
  0x55   : > { %p762_p1 = pneg %p761_p4 }
  0x56   : > { %p768_p9 = por %p767_p6, %p766_p7 }
  0x58   : > { %p769_p12 = pnand %p768_p9, %p762_p1 }
  0x5a   : > { %772 = shalt.err (!%p769_p12)
}
  0x5b   : > { %s773_s25 = scalar_lea.vmem %s1053_s9, 128  ;;  %s864_s5 = smov [#allocation7]  }
  0x5c   : > { %p774_p0 = scmp.ne.s32.totalorder %s1053_s9, %s773_s25  ;;  %s778_s19 = sshll.u32 %s864_s5, 4  ;;  %s779_s19 = int_to_ptr.vmem [resolvable:$false] %s778_s19 }
  0x5d   : > { %s780_s20 = scalar_lea.vmem %s779_s19, 256  ;;  %p781_p11 = scmp.lt.s32.totalorder %s1053_s9, %s779_s19 }
  0x5e   : > { %p776_p8 = pnand %p774_p0, %p972_p2  ;;  %p782_p4 = scmp.lt.s32.totalorder %s780_s20, %s773_s25 }
  0x60   : > { %p777_p10 = pneg %p776_p8  ;;  %p783_p3 = por %p782_p4, %p781_p11 }
  0x62   : > { %p784_p5 = pnand %p783_p3, %p777_p10 }
  0x64   : > { %787 = shalt.err (!%p784_p5)
}
  0x65   : > { %s865_s0 = smov 64   ;;  %s866_s4 = smov 4  }
  0x66   : > { %645 = dma.hbm_to_vmem [thread:$0]  (!%p949_p13), %s1049_s27, 128, %s1053_s9, %s966_s8, %s865_s0, %s865_s0, %s866_s4  }
  0x67   : > { %p1196_p2 = scmp.ne.s32.totalorder %s1193_s29, 0 }
  0x68   : > { %s1080_s10 = sand.u32 (!%p1196_p2), 1, %s850_s13   ;;  %p1197_p1 = scmp.ne.s32.totalorder (!%p1196_p2), %s1186_s22, 0 }
  0x69   : > { %209 = sbr.rel (%p1196_p2) target bundleno = 524 (0x20c), region = 32  ;;  %s613_s26 = sshll.u32 (!%p1196_p2), %s1080_s10, 4 }
  0x6a   : > { %s212_s30 = scalar_lea.sflag (!%p1196_p2), [#allocation3], %s1080_s10  ;;  %s215_s6 = scalar_lea.vmem (!%p1196_p2), [#allocation2], %s613_s26 }
  0x70   : > { %833 = dma.done.wait (%p1197_p1), %s212_s30, 256  }
  0x71   : > { %835 = vsyncadd (%p1197_p1), %s212_s30, 4294967040  ;;  %s220_s28 = sand.u32 1, %s911_s16   ;;  %s224_s29 = scalar_lea.vmem [#allocation5], %s613_s26 }
  0x72   : > { %s221_s8 = scalar_lea.sflag [#allocation6], %s220_s28 }
  0x73   : > { %837 = dma.done.wait (%p1197_p1), %s221_s8, 384  }
  0x74   : > { %839 = vsyncadd (%p1197_p1), %s221_s8, 4294966912  ;;  %v267_v0 = vld [vmem:[%s224_s29] sm:$0xff]  ;;  %v268_v1 = vld [vmem:[%s224_s29 + $0x8] sm:$0xff]  ;;  %vm275_vm0 = vcmask 1040384   ;;  %vm282_vm1 = vcmask 1046528   ;;  %s867_s22 = smov 1  }
  0x75   : > { %v265_v2 = vld [vmem:[%s215_s6] sm:$0xff]  ;;  %v345_v3 = vrot.slane %v267_v0, 7  ;;  %v351_v4 = vrot.slane %v267_v0, 1  ;;  %v352_v5 = vrot.slane %v268_v1, 1  ;;  %v266_v6 = vld [vmem:[%s215_s6 + $0x8] sm:$0xff]  ;;  %v346_v10 = vrot.slane %v268_v1, 7 }
  0x76   : > { %v276_v7 = vrot.slane %v265_v2, 7  ;;  %v283_v8 = vrot.slane %v265_v2, 1  ;;  %v284_v9 = vrot.slane %v266_v6, 1  ;;  %v277_v11 = vrot.slane %v266_v6, 7  ;;  %s868_s27 = smov 127   ;;  %s615_s9 = sshll.u32 %s1080_s10, 3 }
  0x77   : > { %v350_v12 = vsel %vm275_vm0, 0.0, %v345_v3  ;;  %v353_v13 = vsel %vm282_vm1, %v351_v4, %v352_v5  ;;  %v356_v15 = vsel %vm282_vm1, %v352_v5, 0.0  ;;  %v347_v18 = vsel %vm275_vm0, %v345_v3, %v346_v10  ;;  %s233_s7 = scalar_lea.vmem [#allocation7], %s615_s9  ;;  %s264_s17 = scalar_lea.vmem [#allocation8], %s1080_s10 }
  0x78   : > { %v281_v14 = vsel %vm275_vm0, 0.0, %v276_v7  ;;  %v1097_v16 = vsub.f32 %v350_v12, %v353_v13  ;;  %v285_v17 = vsel %vm282_vm1, %v283_v8, %v284_v9  ;;  %v278_v19 = vsel %vm275_vm0, %v276_v7, %v277_v11  ;;  %s491_s11 = sshll.u32 %s264_s17, 4  ;;  %s616_s25 = sshll.u32 %s911_s16, 4  ;;  %s1130_s11 = int_to_ptr.vmem [resolvable:$true] %s491_s11 }
  0x79   : > { %v295_v20 = vsub.f32 %v281_v14, %v285_v17  ;;  %v288_v21 = vsel %vm282_vm1, %v284_v9, 0.0  ;;  %v289_v22 = vmul.f32 2.0, %v265_v2  ;;  %v1104_v23 = vsub.f32 %v347_v18, %v356_v15  ;;  %s1135_s0 = scalar_lea.hbm %s1180_s3, %s616_s25  ;;  %s479_s4 = scalar_lea.sflag [#allocation4], %s1080_s10 }
  0x7a   : > { %387 = vrot.lane.b32.xlu1 %v1097_v16, %s867_s22  ;;  %v290_v24 = vmul.f32 2.0, %v266_v6  ;;  %v296_v25 = vsub.f32 %v278_v19, %v288_v21  ;;  %v358_v30 = vmul.f32 2.0, %v268_v1  ;;  %v357_v31 = vmul.f32 2.0, %v267_v0  ;;  %s788_s26 = scalar_lea.vmem %s1130_s11, 16  ;;  %p1198_p7 = scmp.ne.s32.totalorder %s1187_s23, 0 }
  0x7b   : > { %321 = vrot.lane.b32.xlu0 %v295_v20, %s867_s22  ;;  %v291_v26 = vadd.f32 %v289_v22, %v281_v14  ;;  %vm305_vm2 = vcmask 7168   ;;  %vm314_vm3 = vcmask 121856   ;;  %v329_v44 = vmul.f32 2.0, %v295_v20  ;;  %p789_p13 = scmp.ne.s32.totalorder %s1130_s11, %s788_s26  ;;  %s869_s16 = smov [#allocation8]  }
  0x7c   : > { %v292_v27 = vadd.f32 %v290_v24, %v278_v19  ;;  %v360_v32 = vadd.f32 %v358_v30, %v347_v18  ;;  %v359_v33 = vadd.f32 %v357_v31, %v350_v12  ;;  %v330_v42 = vmul.f32 2.0, %v296_v25  ;;  %s792_s30 = sshll.u32 %s869_s16, 4  ;;  %s793_s30 = int_to_ptr.vmem [resolvable:$false] %s792_s30 }
  0x7d   : > { %v293_v29 = vadd.f32 %v291_v26, %v285_v17  ;;  %v396_v4 = vmul.f32 2.0, %v1104_v23  ;;  %v395_v7 = vmul.f32 2.0, %v1097_v16  ;;  %vm463_vm4 = vcmask 130048   ;;  %p790_p6 = pnand %p789_p13, %p1198_p7  ;;  %s794_s6 = scalar_lea.vmem %s793_s30, 32 }
  0x7e   : > { %389 = vrot.lane.b32.xlu1 %v1104_v23, %s867_s22  ;;  %v294_v28 = vadd.f32 %v292_v27, %v288_v21  ;;  %v362_v34 = vadd.f32 %v360_v32, %v356_v15  ;;  %v361_v35 = vadd.f32 %v359_v33, %v353_v13  ;;  %p795_p12 = scmp.lt.s32.totalorder %s1130_s11, %s793_s30  ;;  %p796_p0 = scmp.lt.s32.totalorder %s794_s6, %s788_s26 }
  0x7f   : > { %323 = vrot.lane.b32.xlu0 %v296_v25, %s867_s22  ;;  %p791_p9 = pneg %p790_p6 }
  0x80   : > { %p797_p8 = por %p796_p0, %p795_p12 }
  0x82   : > { %301 = vrot.lane.b32.xlu1 %v294_v28, %s867_s22  ;;  %p798_p10 = pnand %p797_p8, %p791_p9 }
  0x83   : > { %299 = vrot.lane.b32.xlu0 %v293_v29, %s867_s22 }
  0x86   : > { %310 = vrot.lane.b32.xlu1 %v294_v28, %s868_s27 }
  0x87   : > { %308 = vrot.lane.b32.xlu0 %v293_v29, %s868_s27 }
  0x8a   : > { %335 = vrot.lane.b32.xlu1 %v296_v25, %s868_s27 }
  0x8b   : > { %333 = vrot.lane.b32.xlu0 %v295_v20, %s868_s27 }
  0x8e   : > { %369 = vrot.lane.b32.xlu1 %v362_v34, %s867_s22 }
  0x8f   : > { %367 = vrot.lane.b32.xlu0 %v361_v35, %s867_s22 }
  0x92   : > { %377 = vrot.lane.b32.xlu1 %v362_v34, %s868_s27 }
  0x93   : > { %375 = vrot.lane.b32.xlu0 %v361_v35, %s868_s27 }
  0x96   : > { %401 = vrot.lane.b32.xlu1 %v1104_v23, %s868_s27 }
  0x97   : > { %399 = vrot.lane.b32.xlu0 %v1097_v16, %s868_s27 }
  0xec   : > { %v388_v36 = vpop.permute.xlu1 %387 }
  0xed   : > { %v322_v37 = vpop.permute.xlu0 %321  ;;  %v393_v12 = vsel %vm305_vm2, 0.0, %v388_v36 }
  0xee   : > { %v327_v47 = vsel %vm305_vm2, 0.0, %v322_v37  ;;  %v397_v21 = vadd.f32 %v395_v7, %v393_v12 }
  0xef   : > { %v331_v52 = vadd.f32 %v329_v44, %v327_v47 }
  0xf0   : > { %v390_v38 = vpop.permute.xlu1 %389 }
  0xf1   : > { %v324_v39 = vpop.permute.xlu0 %323  ;;  %v394_v8 = vsel %vm305_vm2, 0.0, %v390_v38 }
  0xf2   : > { %v328_v45 = vsel %vm305_vm2, 0.0, %v324_v39  ;;  %v398_v15 = vadd.f32 %v396_v4, %v394_v8 }
  0xf3   : > { %v332_v49 = vadd.f32 %v330_v42, %v328_v45 }
  0xf4   : > { %v302_v40 = vpop.permute.xlu1 %301 }
  0xf5   : > { %v300_v41 = vpop.permute.xlu0 %299  ;;  %v307_v53 = vsel %vm305_vm2, 0.0, %v302_v40 }
  0xf6   : > { %v306_v56 = vsel %vm305_vm2, 0.0, %v300_v41 }
  0xf8   : > { %v311_v43 = vpop.permute.xlu1 %310 }
  0xf9   : > { %v309_v46 = vpop.permute.xlu0 %308  ;;  %v316_v48 = vsel %vm314_vm3, %v311_v43, 0.0 }
  0xfa   : > { %v315_v50 = vsel %vm314_vm3, %v309_v46, 0.0  ;;  %v318_v57 = vsub.f32 %v307_v53, %v316_v48 }
  0xfb   : > { %v317_v60 = vsub.f32 %v306_v56, %v315_v50 }
  0xfc   : > { %v336_v51 = vpop.permute.xlu1 %335  ;;  %v410_v2 = vmul.f32 %v318_v57, %v318_v57 }
  0xfd   : > { %v334_v54 = vpop.permute.xlu0 %333  ;;  %v340_v55 = vsel %vm314_vm3, %v336_v51, 0.0  ;;  %v409_v3 = vmul.f32 %v317_v60, %v317_v60 }
  0xfe   : > { %v339_v58 = vsel %vm314_vm3, %v334_v54, 0.0  ;;  %v342_v59 = vadd.f32 %v340_v55, %v332_v49 }
  0xff   : > { %v341_v61 = vadd.f32 %v339_v58, %v331_v52 }
 0x100   : > { %v412_v62 = vmul.f32 %v342_v59, %v342_v59  ;;  %v370_v63 = vpop.permute.xlu1 %369 }
 0x101   : > { %v411_v0 = vmul.f32 %v341_v61, %v341_v61  ;;  %v368_v1 = vpop.permute.xlu0 %367  ;;  %v374_v14 = vsel %vm305_vm2, 0.0, %v370_v63 }
 0x102   : > { %v414_v5 = vadd.f32 %v412_v62, %v410_v2  ;;  %v373_v18 = vsel %vm305_vm2, 0.0, %v368_v1 }
 0x103   : > { %v413_v9 = vadd.f32 %v411_v0, %v409_v3 }
 0x104   : > { %v378_v6 = vpop.permute.xlu1 %377  ;;  %v416_v17 = vadd.f32 1e-06, %v414_v5 }
 0x105   : > { %v376_v10 = vpop.permute.xlu0 %375  ;;  %v382_v11 = vsel %vm314_vm3, %v378_v6, 0.0  ;;  %v415_v16 = vadd.f32 1e-06, %v413_v9 }
 0x106   : > { %v381_v13 = vsel %vm314_vm3, %v376_v10, 0.0  ;;  %v384_v19 = vsub.f32 %v374_v14, %v382_v11  ;;  %690 = vrsqrt.f32 %v416_v17 }
 0x107   : > { %v383_v22 = vsub.f32 %v373_v18, %v381_v13  ;;  %692 = vrsqrt.f32 %v415_v16 }
 0x108   : > { %v402_v20 = vpop.permute.xlu1 %401  ;;  %v418_v28 = vmul.f32 %v384_v19, %v384_v19  ;;  %v434_v42 = vmul.f32 %v384_v19, %v318_v57 }
 0x109   : > { %v400_v23 = vpop.permute.xlu0 %399  ;;  %v406_v24 = vsel %vm314_vm3, %v402_v20, 0.0  ;;  %v417_v31 = vmul.f32 %v383_v22, %v383_v22  ;;  %v433_v44 = vmul.f32 %v383_v22, %v317_v60  ;;  %v623_v60 = vld [vmem:[%s233_s7] sm:$0xff]  }
 0x10a   : > { %v405_v25 = vsel %vm314_vm3, %v400_v23, 0.0  ;;  %v408_v26 = vadd.f32 %v406_v24, %v398_v15  ;;  %v625_v3 = vunpack.c.h.bf16 %v623_v60  ;;  %v624_v6 = vunpack.c.l.bf16 %v623_v60 }
 0x10b   : > { %v407_v27 = vadd.f32 %v405_v25, %v397_v21 }
 0x10c   : > { %v420_v29 = vmul.f32 %v408_v26, %v408_v26  ;;  %v436_v30 = vmul.f32 %v408_v26, %v342_v59 }
 0x10d   : > { %v419_v32 = vmul.f32 %v407_v27, %v407_v27  ;;  %v435_v33 = vmul.f32 %v407_v27, %v341_v61 }
 0x10e   : > { %v422_v34 = vadd.f32 %v420_v29, %v418_v28  ;;  %v438_v48 = vadd.f32 %v436_v30, %v434_v42 }
 0x10f   : > { %v421_v35 = vadd.f32 %v419_v32, %v417_v31  ;;  %v437_v52 = vadd.f32 %v435_v33, %v433_v44 }
 0x110   : > { %v424_v36 = vadd.f32 1e-06, %v422_v34  ;;  %v691_v38 = vpop.eup %690 }
 0x111   : > { %v423_v37 = vadd.f32 1e-06, %v421_v35  ;;  %v693_v39 = vpop.eup %692  ;;  %v430_v40 = vmul.f32 %v691_v38, %v416_v17 }
 0x112   : > { %694 = vrsqrt.f32 %v424_v36  ;;  %v429_v41 = vmul.f32 %v693_v39, %v415_v16 }
 0x113   : > { %696 = vrsqrt.f32 %v423_v37  ;;  %v450_v46 = vmul.f32 1.5, %v430_v40 }
 0x114   : > { %v449_v50 = vmul.f32 1.5, %v429_v41 }
 0x11c   : > { %v695_v43 = vpop.eup %694 }
 0x11d   : > { %v697_v45 = vpop.eup %696  ;;  %v432_v47 = vmul.f32 %v695_v43, %v424_v36  ;;  %v440_v49 = vmul.f32 %v695_v43, %v691_v38 }
 0x11e   : > { %v431_v51 = vmul.f32 %v697_v45, %v423_v37  ;;  %v439_v53 = vmul.f32 %v697_v45, %v693_v39 }
 0x11f   : > { %v442_v54 = vmul.f32 %v440_v49, %v438_v48  ;;  %v452_v55 = vsub.f32 %v450_v46, %v432_v47 }
 0x120   : > { %v441_v56 = vmul.f32 %v439_v53, %v437_v52  ;;  %v451_v58 = vsub.f32 %v449_v50, %v431_v51 }
 0x121   : > { %v444_v59 = vand.u32 2147483647, %v442_v54  ;;  %v454_v57 = vmax.f32 %v452_v55, 0.0 }
 0x122   : > { %v443_v61 = vand.u32 2147483647, %v441_v56  ;;  %v453_v0 = vmax.f32 %v451_v58, 0.0 }
 0x123   : > { %v446_v62 = vsub.f32 1.0, %v444_v59  ;;  %v458_v5 = vmul.f32 0.5, %v454_v57 }
 0x124   : > { %v445_v63 = vsub.f32 1.0, %v443_v61  ;;  %v457_v8 = vmul.f32 0.5, %v453_v0 }
 0x125   : > { %v448_v1 = vmul.f32 %v446_v62, %v432_v47 }
 0x126   : > { %v447_v2 = vmul.f32 %v445_v63, %v431_v51 }
 0x127   : > { %v456_v4 = vmul.f32 0.5, %v448_v1 }
 0x128   : > { %v455_v7 = vmul.f32 0.5, %v447_v2 }
 0x129   : > { %v460_v9 = vadd.f32 %v458_v5, %v456_v4 }
 0x12a   : > { %v459_v10 = vadd.f32 %v457_v8, %v455_v7 }
 0x12b   : > { %v462_v11 = vmul.f32 %v625_v3, %v460_v9 }
 0x12c   : > { %v461_v12 = vmul.f32 %v624_v6, %v459_v10 }
 0x12d   : > { %v465_v13 = vsel %vm463_vm4, %v462_v11, 0.0 }
 0x12e   : > { %v464_v14 = vsel %vm463_vm4, %v461_v12, 0.0 }
 0x12f   : > { %v466_v15 = vadd.f32 %v465_v13, %v464_v14 }
 0x131   : > { %467 = vadd.xlane.f32.xlu0 %v466_v15 }
 0x1be   : > { %v468_v17 = vpop.xlane.xlu0 %467 }
 0x1bf   : > { %v469_v18 = vrot.slane %v468_v17, 4 }
 0x1c1   : > { %v470_v19 = vadd.f32 %v469_v18, %v468_v17 }
 0x1c3   : > { %v471_v20 = vrot.slane %v470_v19, 2 }
 0x1c5   : > { %v472_v21 = vadd.f32 %v471_v20, %v470_v19 }
 0x1c7   : > { %v473_v16 = vrot.slane %v472_v21, 1 }
 0x1c9   : > { %v474_v22 = vadd.f32 %v473_v16, %v472_v21 }
 0x1cb   : > { %626 = vpush %v474_v22 }
 0x1fc   : > { %s627_s5 = spop %626 }
 0x1fd   : > { %v476_v23 = vstv %s627_s5 }
 0x1fe   : > { %477 = vst [vmem:[%s264_s17] sm:$0x1] %v476_v23 }
 0x1ff   : > { %801 = shalt.err (!%p798_p10)
}
 0x200   : > { %s802_s10 = scalar_lea.hbm %s1135_s0, 16  ;;  %s806_s29 = scalar_lea.hbm %s1180_s3, 32 }
 0x201   : > { %p803_p11 = scmp.ne.s32.totalorder %s1135_s0, %s802_s10  ;;  %p807_p5 = scmp.lt.u32.totalorder %s1135_s0, %s1180_s3 }
 0x202   : > { %p808_p2 = scmp.lt.u32.totalorder %s806_s29, %s802_s10  ;;  %p810_p13 = scmp.lt.u32.totalorder %s802_s10, %s1135_s0 }
 0x203   : > { %p804_p4 = pnand %p803_p11, %p1198_p7 }
 0x204   : > { %p809_p1 = por %p808_p2, %p807_p5 }
 0x205   : > { %p805_p3 = pneg %p804_p4 }
 0x206   : > { %p811_p6 = por %p810_p13, %p809_p1 }
 0x208   : > { %p812_p9 = pnand %p811_p6, %p805_p3 }
 0x20a   : > { %815 = shalt.err (!%p812_p9)
}
 0x20b   : > { %634 = dma.vmem_to_hbm [thread:$0]  (%p1198_p7), %s1130_s11, 16, %s1135_s0, %s479_s4  }
 0x20c PF: > { %s503_s9 = sand.u32 1, %s846_s12   ;;  %p1199_p12 = scmp.ne.s32.totalorder %s1188_s24, 0 }
 0x20d   : > { %p1200_p0 = scmp.ge.s32.totalorder %s858_s15, 2  ;;  %s504_s7 = scalar_lea.sflag [#allocation4], %s503_s9 }
 0x20f   : > { %p647_p8 = pnand %p1200_p0, %p1199_p12 }
 0x211   : > { %841 = dma.done.wait (!%p647_p8), %s504_s7, 16  }
 0x212   : > { %843 = vsyncadd (!%p647_p8), %s504_s7, 4294967280  ;;  %p19_p10 = scmp.ge.s32.totalorder %s915_s18, 4   ;;  %s1201_s12 = smov %s850_s13 }
 0x213   : > { %s1202_s13 = smov %s854_s14  ;;  %s1203_s14 = smov %s927_s21 }
 0x214   : > { %s1204_s15 = smov %s915_s18  ;;  %21 = sbr.rel (!%p19_p10) target bundleno = 9 (0x9), region = 101 }
 0x21b   :  { %508 = vsyncpa [#allocation3], 1 }
 0x21c   :  { %510 = vsyncpa [#allocation3 + $0x1], 1 }
 0x21d   :  { %511 = vsyncpa [#allocation6], 1 }
 0x21e   :  { %513 = vsyncpa [#allocation6 + $0x1], 1 }
 0x21f   :  { %514 = vsyncpa [#allocation4], 1 }
 0x220   :  { %516 = vsyncpa [#allocation4 + $0x1], 1 }

</bundles_post_ra>
